<compile_context>
chip_gen: v5e
topology: v5e:2x2
jax: 0.10.0
libtpu: 0.0.40
codegen_flags: <defaults>
</compile_context>

<pallas_src>
import functools

import jax
import jax.numpy as jnp
from jax.experimental import pallas as pl
from jax.experimental.pallas import tpu as pltpu


# Rows of 128 lanes per grid step.  3 ch * 128 lanes * 4 B * (in+out) * 2 bufs
# * 1024 rows ~= 6 MiB VMEM -> safely inside every generation's scoped default.
_MAX_ROWS_PER_STEP = 1024


def _round_up(a, b):
    return -(-a // b) * b


def _conv_bn_relu_kernel(w_ref, s_ref, x_ref, o_ref, *, cin, cout):
    # w_ref: (cout*cin,) SMEM  folded weights  w'[co,ci] = scale[co]*W[co,ci]
    # s_ref: (cout,)     SMEM  folded shifts   s'[co] = scale[co]*(b[co]-mu[co])+beta[co]
    # x_ref: (Bblk, cin,  S, 128) VMEM  (each x[:, ci] is a dense (Bblk,S,128) slab)
    # o_ref: (Bblk, cout, S, 128) VMEM
    x = x_ref[...]
    for co in range(cout):
        acc = x[:, 0] * w_ref[co * cin + 0]
        for ci in range(1, cin):
            acc = acc + x[:, ci] * w_ref[co * cin + ci]
        o_ref[:, co] = jnp.maximum(acc + s_ref[co], 0.0)


def conv_bn_relu(x_nchw, conv_w, conv_b, bn_gamma, bn_beta, bn_mean, bn_var,
                 *, eps=1e-5, training=True):
    """Forward of basic_model: Conv2d(3,3,1) -> BatchNorm2d(3) -> ReLU (NCHW)."""
    N, Cin, H, W = x_nchw.shape
    Cout = conv_w.shape[0]
    HW = H * W

    x_flat = x_nchw.reshape(N, Cin, HW).astype(jnp.float32)
    w_mat = conv_w.reshape(Cout, Cin).astype(jnp.float32)
    hi = jax.lax.Precision.HIGHEST

    if training:
        # Exact train-mode BN (PyTorch default): batch statistics of the conv
        # output, obtained by propagating mean/covariance of x through the 1x1
        # conv (one extra cheap pass over x; no need to materialize y twice).
        cnt = N * HW
        mean_x = jnp.mean(x_flat, axis=(0, 2))                          # (Cin,)
        xc = x_flat - mean_x[None, :, None]
        cov_x = jnp.einsum("nch,ndh->cd", xc, xc, precision=hi) / cnt   # (Cin,Cin)
        mu = jnp.einsum("oc,c->o", w_mat, mean_x, precision=hi) + conv_b
        var = jnp.einsum("oc,cd,od->o", w_mat, cov_x, w_mat, precision=hi)
    else:
        mu, var = bn_mean, bn_var

    scale = bn_gamma * jax.lax.rsqrt(var + eps)                         # (Cout,)
    w_folded = (w_mat * scale[:, None]).reshape(Cout * Cin).astype(jnp.float32)
    shift_folded = (scale * (conv_b - mu) + bn_beta).astype(jnp.float32)

    # ---- tiling: pad HW to rows of 128 lanes, rows padded to a multiple of 8.
    rows = -(-HW // 128)
    rows8 = _round_up(rows, 8)
    fold_batch = N * rows8 <= _MAX_ROWS_PER_STEP

    if fold_batch:
        # Whole (padded) tensor in one block / one grid step.
        b_blk, s_blk, s_total = N, rows8, rows8
        grid = (1,)
        idx_map = lambda i, *_: (0, 0, 0, 0)
        dims = ("arbitrary",)
    else:
        ntiles = -(-rows // _MAX_ROWS_PER_STEP)
        s_blk = _round_up(-(-rows // ntiles), 8)
        s_total = ntiles * s_blk
        b_blk = 1
        grid = (N, ntiles)
        idx_map = lambda n, t, *_: (n, 0, t, 0)
        dims = ("parallel", "parallel")

    hw_pad = s_total * 128
    if hw_pad != HW:
        x_flat = jnp.pad(x_flat, ((0, 0), (0, 0), (0, hw_pad - HW)))
    x4 = x_flat.reshape(N, Cin, s_total, 128)

    kernel = functools.partial(_conv_bn_relu_kernel, cin=Cin, cout=Cout)

    out4 = pl.pallas_call(
        kernel,
        out_shape=jax.ShapeDtypeStruct((N, Cout, s_total, 128), jnp.float32),
        grid_spec=pltpu.PrefetchScalarGridSpec(
            num_scalar_prefetch=2,   # folded weights + shifts land in SMEM
            grid=grid,
            in_specs=[pl.BlockSpec((b_blk, Cin, s_blk, 128), idx_map)],
            out_specs=pl.BlockSpec((b_blk, Cout, s_blk, 128), idx_map),
        ),
        compiler_params=pltpu.CompilerParams(dimension_semantics=dims),
    )(w_folded, shift_folded, x4)

    out = out4.reshape(N, Cout, hw_pad)[:, :, :HW].reshape(N, Cout, H, W)
    return out


if __name__ == "__main__":
    key = jax.random.PRNGKey(0)
    k_x, k_w, k_b, k_g, k_be, k_m, k_v = jax.random.split(key, 7)

    # Shapes consistent with the module: batch=2, channels=3, spatial=16x16.
    N, C, H, W = 2, 3, 16, 16
    x = jax.random.normal(k_x, (N, C, H, W), dtype=jnp.float32)

    conv_w = jax.random.normal(k_w, (3, 3, 1, 1), dtype=jnp.float32) * 0.5
    conv_b = jax.random.normal(k_b, (3,), dtype=jnp.float32) * 0.1

    bn_gamma = 1.0 + 0.1 * jax.random.normal(k_g, (3,), dtype=jnp.float32)
    bn_beta = 0.1 * jax.random.normal(k_be, (3,), dtype=jnp.float32)
    bn_mean = 0.1 * jax.random.normal(k_m, (3,), dtype=jnp.float32)
    bn_var = jnp.abs(1.0 + 0.1 * jax.random.normal(k_v, (3,), dtype=jnp.float32))

    eps = 1e-5
    hi = jax.lax.Precision.HIGHEST

    # Pure-JAX reference: conv -> BN -> ReLU.
    y = jnp.einsum("oc,nchw->nohw", conv_w.reshape(3, 3), x, precision=hi) \
        + conv_b[None, :, None, None]

    # Train-mode BN reference (batch statistics, biased variance — PyTorch default).
    mu_t = y.mean(axis=(0, 2, 3))
    var_t = y.var(axis=(0, 2, 3))
    ref_train = jnp.maximum(
        (y - mu_t[None, :, None, None])
        / jnp.sqrt(var_t + eps)[None, :, None, None]
        * bn_gamma[None, :, None, None] + bn_beta[None, :, None, None], 0.0)

    # Eval-mode BN reference (running statistics).
    ref_eval = jnp.maximum(
        (y - bn_mean[None, :, None, None])
        / jnp.sqrt(bn_var + eps)[None, :, None, None]
        * bn_gamma[None, :, None, None] + bn_beta[None, :, None, None], 0.0)

    out_train = conv_bn_relu(x, conv_w, conv_b, bn_gamma, bn_beta, bn_mean,
                             bn_var, eps=eps, training=True)
    out_eval = conv_bn_relu(x, conv_w, conv_b, bn_gamma, bn_beta, bn_mean,
                            bn_var, eps=eps, training=False)
    jax.block_until_ready((out_train, out_eval))

    assert out_train.shape == (N, C, H, W)
    assert out_eval.shape == (N, C, H, W)
    assert jnp.allclose(out_train, ref_train, atol=1e-4, rtol=1e-4)
    assert jnp.allclose(out_eval, ref_eval, atol=1e-5, rtol=1e-5)

    print("KERNEL_OK")
</pallas_src>

<mosaic_0001>
module attributes {stable_mosaic.version = 11 : i64} {
  func.func @_conv_bn_relu_kernel(%arg0: i32, %arg1: memref<9xf32, #tpu.memory_space<smem>>, %arg2: memref<3xf32, #tpu.memory_space<smem>>, %arg3: memref<2x3x8x128xf32, #tpu.memory_space<vmem>>, %arg4: memref<2x3x8x128xf32, #tpu.memory_space<vmem>>) attributes {dimension_semantics = [#tpu.dimension_semantics<arbitrary>], iteration_bounds = array<i64: 1>, scalar_prefetch = 2 : i64, scratch_operands = 0 : i64, tpu.core_type = #tpu.core_type<tc>, window_params = [{pipeline_mode = #tpu.pipeline_mode<synchronous>, transform_indices = @transform_0, window_bounds = array<i64: 2, 3, 8, 128>}, {pipeline_mode = #tpu.pipeline_mode<synchronous>, transform_indices = @transform_1, window_bounds = array<i64: 2, 3, 8, 128>}]} {
    %c0 = arith.constant 0 : index
    %c0_0 = arith.constant 0 : index
    %c0_1 = arith.constant 0 : index
    %c0_2 = arith.constant 0 : index
    %0 = vector.load %arg3[%c0, %c0_0, %c0_1, %c0_2] : memref<2x3x8x128xf32, #tpu.memory_space<vmem>>, vector<2x3x8x128xf32>
    %1 = vector.extract_strided_slice %0 {offsets = [0, 0, 0, 0], sizes = [2, 1, 8, 128], strides = [1, 1, 1, 1]} : vector<2x3x8x128xf32> to vector<2x1x8x128xf32>
    %2 = vector.shape_cast %1 : vector<2x1x8x128xf32> to vector<2x8x128xf32>
    %c0_3 = arith.constant 0 : index
    %3 = memref.load %arg1[%c0_3] : memref<9xf32, #tpu.memory_space<smem>>
    %4 = vector.broadcast %3 : f32 to vector<2x8x128xf32>
    %5 = arith.mulf %2, %4 : vector<2x8x128xf32>
    %6 = vector.extract_strided_slice %0 {offsets = [0, 1, 0, 0], sizes = [2, 1, 8, 128], strides = [1, 1, 1, 1]} : vector<2x3x8x128xf32> to vector<2x1x8x128xf32>
    %7 = vector.shape_cast %6 : vector<2x1x8x128xf32> to vector<2x8x128xf32>
    %c1 = arith.constant 1 : index
    %8 = memref.load %arg1[%c1] : memref<9xf32, #tpu.memory_space<smem>>
    %9 = vector.broadcast %8 : f32 to vector<2x8x128xf32>
    %10 = arith.mulf %7, %9 : vector<2x8x128xf32>
    %11 = arith.addf %5, %10 : vector<2x8x128xf32>
    %12 = vector.extract_strided_slice %0 {offsets = [0, 2, 0, 0], sizes = [2, 1, 8, 128], strides = [1, 1, 1, 1]} : vector<2x3x8x128xf32> to vector<2x1x8x128xf32>
    %13 = vector.shape_cast %12 : vector<2x1x8x128xf32> to vector<2x8x128xf32>
    %c2 = arith.constant 2 : index
    %14 = memref.load %arg1[%c2] : memref<9xf32, #tpu.memory_space<smem>>
    %15 = vector.broadcast %14 : f32 to vector<2x8x128xf32>
    %16 = arith.mulf %13, %15 : vector<2x8x128xf32>
    %17 = arith.addf %11, %16 : vector<2x8x128xf32>
    %c0_4 = arith.constant 0 : index
    %18 = memref.load %arg2[%c0_4] : memref<3xf32, #tpu.memory_space<smem>>
    %19 = vector.broadcast %18 : f32 to vector<2x8x128xf32>
    %20 = arith.addf %17, %19 : vector<2x8x128xf32>
    %cst = arith.constant 0.000000e+00 : f32
    %21 = vector.broadcast %cst : f32 to vector<2x8x128xf32>
    %22 = arith.maximumf %20, %21 : vector<2x8x128xf32>
    %c0_5 = arith.constant 0 : index
    %c0_6 = arith.constant 0 : index
    %c0_7 = arith.constant 0 : index
    %c0_8 = arith.constant 0 : index
    %23 = vector.load %arg4[%c0_5, %c0_6, %c0_7, %c0_8] : memref<2x3x8x128xf32, #tpu.memory_space<vmem>>, vector<2x1x8x128xf32>
    %24 = vector.shape_cast %23 : vector<2x1x8x128xf32> to vector<2x8x128xf32>
    %25 = vector.shape_cast %22 : vector<2x8x128xf32> to vector<2x1x8x128xf32>
    tpu.vector_store %arg4[%c0_5, %c0_6, %c0_7, %c0_8], %25 {strides = array<i32>} : memref<2x3x8x128xf32, #tpu.memory_space<vmem>>, vector<2x1x8x128xf32>,
    %26 = vector.extract_strided_slice %0 {offsets = [0, 0, 0, 0], sizes = [2, 1, 8, 128], strides = [1, 1, 1, 1]} : vector<2x3x8x128xf32> to vector<2x1x8x128xf32>
    %27 = vector.shape_cast %26 : vector<2x1x8x128xf32> to vector<2x8x128xf32>
    %c3 = arith.constant 3 : index
    %28 = memref.load %arg1[%c3] : memref<9xf32, #tpu.memory_space<smem>>
    %29 = vector.broadcast %28 : f32 to vector<2x8x128xf32>
    %30 = arith.mulf %27, %29 : vector<2x8x128xf32>
    %31 = vector.extract_strided_slice %0 {offsets = [0, 1, 0, 0], sizes = [2, 1, 8, 128], strides = [1, 1, 1, 1]} : vector<2x3x8x128xf32> to vector<2x1x8x128xf32>
    %32 = vector.shape_cast %31 : vector<2x1x8x128xf32> to vector<2x8x128xf32>
    %c4 = arith.constant 4 : index
    %33 = memref.load %arg1[%c4] : memref<9xf32, #tpu.memory_space<smem>>
    %34 = vector.broadcast %33 : f32 to vector<2x8x128xf32>
    %35 = arith.mulf %32, %34 : vector<2x8x128xf32>
    %36 = arith.addf %30, %35 : vector<2x8x128xf32>
    %37 = vector.extract_strided_slice %0 {offsets = [0, 2, 0, 0], sizes = [2, 1, 8, 128], strides = [1, 1, 1, 1]} : vector<2x3x8x128xf32> to vector<2x1x8x128xf32>
    %38 = vector.shape_cast %37 : vector<2x1x8x128xf32> to vector<2x8x128xf32>
    %c5 = arith.constant 5 : index
    %39 = memref.load %arg1[%c5] : memref<9xf32, #tpu.memory_space<smem>>
    %40 = vector.broadcast %39 : f32 to vector<2x8x128xf32>
    %41 = arith.mulf %38, %40 : vector<2x8x128xf32>
    %42 = arith.addf %36, %41 : vector<2x8x128xf32>
    %c1_9 = arith.constant 1 : index
    %43 = memref.load %arg2[%c1_9] : memref<3xf32, #tpu.memory_space<smem>>
    %44 = vector.broadcast %43 : f32 to vector<2x8x128xf32>
    %45 = arith.addf %42, %44 : vector<2x8x128xf32>
    %cst_10 = arith.constant 0.000000e+00 : f32
    %46 = vector.broadcast %cst_10 : f32 to vector<2x8x128xf32>
    %47 = arith.maximumf %45, %46 : vector<2x8x128xf32>
    %c0_11 = arith.constant 0 : index
    %c1_12 = arith.constant 1 : index
    %c0_13 = arith.constant 0 : index
    %c0_14 = arith.constant 0 : index
    %48 = vector.load %arg4[%c0_11, %c1_12, %c0_13, %c0_14] : memref<2x3x8x128xf32, #tpu.memory_space<vmem>>, vector<2x1x8x128xf32>
    %49 = vector.shape_cast %48 : vector<2x1x8x128xf32> to vector<2x8x128xf32>
    %50 = vector.shape_cast %47 : vector<2x8x128xf32> to vector<2x1x8x128xf32>
    tpu.vector_store %arg4[%c0_11, %c1_12, %c0_13, %c0_14], %50 {strides = array<i32>} : memref<2x3x8x128xf32, #tpu.memory_space<vmem>>, vector<2x1x8x128xf32>,
    %51 = vector.extract_strided_slice %0 {offsets = [0, 0, 0, 0], sizes = [2, 1, 8, 128], strides = [1, 1, 1, 1]} : vector<2x3x8x128xf32> to vector<2x1x8x128xf32>
    %52 = vector.shape_cast %51 : vector<2x1x8x128xf32> to vector<2x8x128xf32>
    %c6 = arith.constant 6 : index
    %53 = memref.load %arg1[%c6] : memref<9xf32, #tpu.memory_space<smem>>
    %54 = vector.broadcast %53 : f32 to vector<2x8x128xf32>
    %55 = arith.mulf %52, %54 : vector<2x8x128xf32>
    %56 = vector.extract_strided_slice %0 {offsets = [0, 1, 0, 0], sizes = [2, 1, 8, 128], strides = [1, 1, 1, 1]} : vector<2x3x8x128xf32> to vector<2x1x8x128xf32>
    %57 = vector.shape_cast %56 : vector<2x1x8x128xf32> to vector<2x8x128xf32>
    %c7 = arith.constant 7 : index
    %58 = memref.load %arg1[%c7] : memref<9xf32, #tpu.memory_space<smem>>
    %59 = vector.broadcast %58 : f32 to vector<2x8x128xf32>
    %60 = arith.mulf %57, %59 : vector<2x8x128xf32>
    %61 = arith.addf %55, %60 : vector<2x8x128xf32>
    %62 = vector.extract_strided_slice %0 {offsets = [0, 2, 0, 0], sizes = [2, 1, 8, 128], strides = [1, 1, 1, 1]} : vector<2x3x8x128xf32> to vector<2x1x8x128xf32>
    %63 = vector.shape_cast %62 : vector<2x1x8x128xf32> to vector<2x8x128xf32>
    %c8 = arith.constant 8 : index
    %64 = memref.load %arg1[%c8] : memref<9xf32, #tpu.memory_space<smem>>
    %65 = vector.broadcast %64 : f32 to vector<2x8x128xf32>
    %66 = arith.mulf %63, %65 : vector<2x8x128xf32>
    %67 = arith.addf %61, %66 : vector<2x8x128xf32>
    %c2_15 = arith.constant 2 : index
    %68 = memref.load %arg2[%c2_15] : memref<3xf32, #tpu.memory_space<smem>>
    %69 = vector.broadcast %68 : f32 to vector<2x8x128xf32>
    %70 = arith.addf %67, %69 : vector<2x8x128xf32>
    %cst_16 = arith.constant 0.000000e+00 : f32
    %71 = vector.broadcast %cst_16 : f32 to vector<2x8x128xf32>
    %72 = arith.maximumf %70, %71 : vector<2x8x128xf32>
    %c0_17 = arith.constant 0 : index
    %c2_18 = arith.constant 2 : index
    %c0_19 = arith.constant 0 : index
    %c0_20 = arith.constant 0 : index
    %73 = vector.load %arg4[%c0_17, %c2_18, %c0_19, %c0_20] : memref<2x3x8x128xf32, #tpu.memory_space<vmem>>, vector<2x1x8x128xf32>
    %74 = vector.shape_cast %73 : vector<2x1x8x128xf32> to vector<2x8x128xf32>
    %75 = vector.shape_cast %72 : vector<2x8x128xf32> to vector<2x1x8x128xf32>
    tpu.vector_store %arg4[%c0_17, %c2_18, %c0_19, %c0_20], %75 {strides = array<i32>} : memref<2x3x8x128xf32, #tpu.memory_space<vmem>>, vector<2x1x8x128xf32>,
    return
  }
  func.func @transform_0(%arg0: i32, %arg1: memref<9xf32, #tpu.memory_space<smem>>, %arg2: memref<3xf32, #tpu.memory_space<smem>>) -> (i32, i32, i32, i32) {
    %c0_i32 = arith.constant 0 : i32
    %c0_i32_0 = arith.constant 0 : i32
    %c0_i32_1 = arith.constant 0 : i32
    %c0_i32_2 = arith.constant 0 : i32
    %c0_i32_3 = arith.constant 0 : i32
    return %c0_i32, %c0_i32_0, %c0_i32_1, %c0_i32_2 : i32, i32, i32, i32
  }
  func.func @transform_1(%arg0: i32, %arg1: memref<9xf32, #tpu.memory_space<smem>>, %arg2: memref<3xf32, #tpu.memory_space<smem>>) -> (i32, i32, i32, i32) {
    %c0_i32 = arith.constant 0 : i32
    %c0_i32_0 = arith.constant 0 : i32
    %c0_i32_1 = arith.constant 0 : i32
    %c0_i32_2 = arith.constant 0 : i32
    %c0_i32_3 = arith.constant 0 : i32
    return %c0_i32, %c0_i32_0, %c0_i32_1, %c0_i32_2 : i32, i32, i32, i32
  }
}

</mosaic_0001>

<bundles_post_ra>
// kernel: tpu_custom_call.1
= control target key start
LH: loop header
LB: loop body
LE: loop exit
PB: predicated region body
PF: predicated region fallthrough
CT: control target
= control target key end

     0   :  { %s233_s18 = smov [#allocation3]   ;;  %s234_s19 = smov [#allocation4]   ;;  %s298_s0 = inlined_call_operand.hbm [shape: f32[9], index: 0, kind: input, shape index: {}]   ;;  %s299_s2 = inlined_call_operand.hbm [shape: f32[2,3,8,128], index: 2, kind: input, shape index: {}]   ;;  %s300_s3 = inlined_call_operand.hbm [shape: f32[2,3,8,128], index: 3, kind: output, shape index: {}]   ;;  %s301_s1 = inlined_call_operand.hbm [shape: f32[3], index: 1, kind: input, shape index: {}]  }
   0x1   :  { %s9_s14 = sshll.u32 %s298_s0, 4  ;;  %s14_s17 = sshll.u32 %s301_s1, 4  ;;  %s10_s14 = int_to_ptr.hbm [resolvable:$true] %s9_s14  ;;  %s15_s17 = int_to_ptr.hbm [resolvable:$true] %s14_s17 }
   0x2   :  { %12 = dma.hbm_to_smem %s10_s14, 16, %s233_s18, [#allocation2] }
   0x3   :  { %17 = dma.hbm_to_smem %s15_s17, 16, %s234_s19, [#allocation2] }
   0x4   :  { %227 = dma.done.wait [#allocation2], 32 }
   0x5   :  { %228 = vsyncadd [#allocation2], 4294967264 }
   0x6   :  { %20 = sfence }
   0x7   :  { %21 = vsyncpa [#allocation6], 0 }
   0x8   :  { %22 = vsyncpa [#allocation7], 0  ;;  %s27_s22 = sshll.u32 %s299_s2, 4  ;;  %s235_s0 = smov [#allocation5]   ;;  %s28_s22 = int_to_ptr.hbm [resolvable:$true] %s27_s22 }
   0x9   :  { %s29_s23 = sshll.u32 %s235_s0, 4  ;;  %s236_s1 = smov 128   ;;  %s30_s23 = int_to_ptr.vmem [resolvable:$true] %s29_s23 }
   0xa   :  { %s237_s24 = smov 8  }
   0xb   :  { %35 = dma.hbm_to_vmem [thread:$0]  %s28_s22, 768, %s30_s23, [#allocation6], %s236_s1, %s236_s1, %s237_s24  }
   0xc   :  { %229 = dma.done.wait [#allocation6], 768  }
   0xd   :  { %230 = vsyncadd [#allocation6], 4294966528  ;;  %s46_s25 = sld [smem:[#allocation3]]  ;;  %v40_v0 = vld [vmem:[#allocation5] sm:$0xff]  ;;  %v41_v1 = vld [vmem:[#allocation5 + $0x8] sm:$0xff]  ;;  %s238_s9 = smov [#allocation8]  }
   0xe   :  { %s139_s26 = sld [smem:[#allocation3 + $0x1]]  ;;  %v42_v2 = vld [vmem:[#allocation5 + $0x10] sm:$0xff]  ;;  %v43_v6 = vld [vmem:[#allocation5 + $0x18] sm:$0xff]  ;;  %v44_v7 = vld [vmem:[#allocation5 + $0x20] sm:$0xff]  ;;  %s124_s10 = sshll.u32 %s238_s9, 4  ;;  %s125_s10 = int_to_ptr.vmem [resolvable:$true] %s124_s10 }
   0xf   :  { %s140_s27 = sld [smem:[#allocation3 + $0x2]]  ;;  %v45_v8 = vld [vmem:[#allocation5 + $0x28] sm:$0xff]  ;;  %s126_s13 = sshll.u32 %s300_s3, 4  ;;  %s127_s13 = int_to_ptr.hbm [resolvable:$true] %s126_s13 }
  0x10   :  { %s271_s28 = sld [smem:[#allocation4]] }
  0x11   :  { %s141_s29 = sld [smem:[#allocation3 + $0x3]] }
  0x12   :  { %s273_s30 = sld [smem:[#allocation3 + $0x4]] }
  0x13   :  { %v47_v3 = vstv %s46_s25  ;;  %s275_s2 = sld [smem:[#allocation3 + $0x5]] }
  0x14   :  { %v48_v4 = vmul.f32 %v47_v3, %v40_v0  ;;  %v51_v5 = vstv %s139_s26  ;;  %s277_s4 = sld [smem:[#allocation4 + $0x1]]  ;;  %v49_v11 = vmul.f32 %v47_v3, %v43_v6 }
  0x15   :  { %v52_v9 = vmul.f32 %v51_v5, %v41_v1  ;;  %v57_v10 = vstv %s140_s27  ;;  %v53_v12 = vmul.f32 %v51_v5, %v44_v7  ;;  %s145_s5 = sld [smem:[#allocation3 + $0x6]] }
  0x16   :  { %v58_v13 = vmul.f32 %v57_v10, %v42_v2  ;;  %v59_v14 = vmul.f32 %v57_v10, %v45_v8  ;;  %s279_s6 = sld [smem:[#allocation3 + $0x7]]  ;;  %v63_v18 = vstv %s271_s28 }
  0x17   :  { %v54_v15 = vadd.f32 %v52_v9, %v48_v4  ;;  %v55_v16 = vadd.f32 %v53_v12, %v49_v11  ;;  %v71_v17 = vstv %s141_s29  ;;  %s281_s7 = sld [smem:[#allocation3 + $0x8]] }
  0x18   :  { %v72_v19 = vmul.f32 %v71_v17, %v40_v0  ;;  %v75_v20 = vstv %s273_s30  ;;  %v73_v21 = vmul.f32 %v71_v17, %v43_v6  ;;  %s285_s8 = sld [smem:[#allocation4 + $0x2]] }
  0x19   :  { %v60_v22 = vadd.f32 %v58_v13, %v54_v15  ;;  %v61_v23 = vadd.f32 %v59_v14, %v55_v16  ;;  %v76_v24 = vmul.f32 %v75_v20, %v41_v1  ;;  %v81_v25 = vstv %s275_s2 }
  0x1a   :  { %v82_v26 = vmul.f32 %v81_v25, %v42_v2  ;;  %v87_v27 = vstv %s277_s4  ;;  %v77_v28 = vmul.f32 %v75_v20, %v44_v7  ;;  %v83_v29 = vmul.f32 %v81_v25, %v45_v8 }
  0x1b   :  { %v64_v30 = vadd.f32 %v63_v18, %v60_v22  ;;  %v65_v31 = vadd.f32 %v63_v18, %v61_v23  ;;  %v78_v32 = vadd.f32 %v76_v24, %v72_v19  ;;  %v96_v33 = vstv %s145_s5 }
  0x1c   :  { %v79_v34 = vadd.f32 %v77_v28, %v73_v21  ;;  %v97_v35 = vmul.f32 %v96_v33, %v40_v0  ;;  %v100_v36 = vstv %s279_s6  ;;  %v98_v37 = vmul.f32 %v96_v33, %v43_v6 }
  0x1d   :  { %v66_v38 = vmax.f32 %v64_v30, 0.0  ;;  %v67_v39 = vmax.f32 %v65_v31, 0.0  ;;  %v84_v40 = vadd.f32 %v82_v26, %v78_v32  ;;  %v101_v41 = vmul.f32 %v100_v36, %v41_v1 }
  0x1e   :  { %v85_v42 = vadd.f32 %v83_v29, %v79_v34  ;;  %v106_v43 = vstv %s281_s7  ;;  %v102_v44 = vmul.f32 %v100_v36, %v44_v7  ;;  %v112_v50 = vstv %s285_s8 }
  0x1f   :  { %68 = vst [vmem:[#allocation8] sm:$0xff] %v66_v38  ;;  %v88_v45 = vadd.f32 %v87_v27, %v84_v40  ;;  %v103_v46 = vadd.f32 %v101_v41, %v97_v35  ;;  %v107_v47 = vmul.f32 %v106_v43, %v42_v2  ;;  %v108_v48 = vmul.f32 %v106_v43, %v45_v8 }
  0x20   :  { %69 = vst [vmem:[#allocation8 + $0x18] sm:$0xff] %v67_v39  ;;  %v89_v49 = vadd.f32 %v87_v27, %v85_v42  ;;  %v104_v51 = vadd.f32 %v102_v44, %v98_v37 }
  0x21   :  { %v90_v52 = vmax.f32 %v88_v45, 0.0  ;;  %v109_v53 = vadd.f32 %v107_v47, %v103_v46 }
  0x22   :  { %v91_v54 = vmax.f32 %v89_v49, 0.0  ;;  %v110_v55 = vadd.f32 %v108_v48, %v104_v51 }
  0x23   :  { %93 = vst [vmem:[#allocation8 + $0x8] sm:$0xff] %v90_v52  ;;  %v113_v56 = vadd.f32 %v112_v50, %v109_v53 }
  0x24   :  { %94 = vst [vmem:[#allocation8 + $0x20] sm:$0xff] %v91_v54  ;;  %v114_v57 = vadd.f32 %v112_v50, %v110_v55 }
  0x25   :  { %v115_v58 = vmax.f32 %v113_v56, 0.0 }
  0x26   :  { %v116_v59 = vmax.f32 %v114_v57, 0.0 }
  0x27   :  { %118 = vst [vmem:[#allocation8 + $0x10] sm:$0xff] %v115_v58 }
  0x28   :  { %119 = vst [vmem:[#allocation8 + $0x28] sm:$0xff] %v116_v59 }
  0x29   :  { %132 = dma.vmem_to_hbm [thread:$0]  %s125_s10, 768, %s127_s13, [#allocation7], %s236_s1, %s236_s1, %s237_s24  }
  0x2a   :  { %231 = dma.done.wait [#allocation7], 768  }
  0x2b   :  { %232 = vsyncadd [#allocation7], 4294966528 }
  0x2c   :  { %137 = vsyncpa [#allocation6], 1 }
  0x2d   :  { %138 = vsyncpa [#allocation7], 1 }

</bundles_post_ra>
